<compile_context>
chip_gen: v6e
topology: v6e:2x2x1
jax: 0.10.0
libtpu: 0.0.40
codegen_flags: <defaults>
</compile_context>

<pallas_src>
import jax
import jax.numpy as jnp
import numpy as np
from jax.experimental import pallas as pl
from jax.experimental.pallas import tpu as pltpu

# Small shapes consistent with the module's forward (module: D=28, 2 layers).
BATCH = 2
SEQ_LEN = 8
INPUT_SIZE = 28
HIDDEN = 32
N_CLASSES = 10
N_LAYERS = 2  # hard-coded as two explicit layers below (module uses n_layers=2)


def rnn_kernel(x_ref,        # (B, T, D_in)
               wih0_ref,     # (D_in, H)  == W_ih_l0.T
               whh0_ref,     # (H, H)     == W_hh_l0.T
               b0_ref,       # (1, H)     == b_ih_l0 + b_hh_l0
               wih1_ref,     # (H, H)     == W_ih_l1.T
               whh1_ref,     # (H, H)     == W_hh_l1.T
               b1_ref,       # (1, H)     == b_ih_l1 + b_hh_l1
               wfc_ref,      # (T*H, C)   == fc.weight.T (t-major rows)
               bfc_ref,      # (1, C)     == fc.bias
               out_ref):     # (B, C)
    B, T, D = x_ref.shape
    H = whh0_ref.shape[0]

    # --- Hoisted input projection: one matmul covers every timestep's layer-0
    # input contribution; bias b0 folded in here so it never re-broadcasts in
    # the loop.  (B,T,D)->(B*T,D) flatten is tile-aligned (T=8 sublanes).
    x_flat = x_ref[...].reshape(B * T, D)                       # (B*T, D)
    pre0 = (jnp.dot(x_flat, wih0_ref[...],
                    preferred_element_type=jnp.float32)
            + b0_ref[...]).reshape(B, T, H)                     # (B, T, H)

    # Hoist weight loads / bias broadcast out of the loop (JAX won't CSE them).
    whh0 = whh0_ref[...]                                        # (H, H)
    wih1 = wih1_ref[...]                                        # (H, H)
    whh1 = whh1_ref[...]                                        # (H, H)
    b1 = jnp.broadcast_to(b1_ref[...], (B, H))                  # (B, H), once

    h0 = jnp.zeros((B, H), jnp.float32)
    h1 = jnp.zeros((B, H), jnp.float32)
    h1_steps = []

    # --- Fully unrolled recurrence (T is small & static): the scheduler can
    # overlap step t's layer-1 work with step t+1's layer-0 MXU push.
    # TODO(synk): could pin whh0 / wih1 / whh1 in MXU weight regs via
    # pltpu.matmul_push_rhs across steps; kept jnp.dot for portability.
    for t in range(T):
        # Layer-1 self-recurrence: depends only on h1_{t-1}, so issue it before
        # this step's serial layer-0 chain (overlaps the h0 dependency).
        h1_rec = jnp.dot(h1, whh1, preferred_element_type=jnp.float32) + b1
        # Layer-0 serial chain: recurrent dot + tanh only.
        h0 = jnp.tanh(pre0[:, t, :]
                      + jnp.dot(h0, whh0,
                                preferred_element_type=jnp.float32))
        # Layer-1 output for this step.
        h1 = jnp.tanh(jnp.dot(h0, wih1, preferred_element_type=jnp.float32)
                      + h1_rec)
        h1_steps.append(h1)

    # --- FC over flattened (T*H) features: lane-concat (XLU, off the serial
    # chain) then one 256-deep contraction, matching the reference's
    # t-major-then-H flattening order.
    h_all = jnp.concatenate(h1_steps, axis=-1)                  # (B, T*H)
    out_ref[...] = (jnp.dot(h_all, wfc_ref[...],
                            preferred_element_type=jnp.float32)
                    + bfc_ref[...])


def rnn_forward(x, params):
    """x: (B, T, D_in) batch_first, like the PyTorch module. Returns (B, C)."""
    B, T, D = x.shape
    (w_ih0, w_hh0, b_ih0, b_hh0,
     w_ih1, w_hh1, b_ih1, b_hh1,
     w_fc, b_fc) = params
    H = w_hh0.shape[0]
    C = w_fc.shape[0]

    # Glue: weight layout transforms done once in plain JAX (no x transpose).
    wih0 = w_ih0.T                                        # (D, H)
    whh0 = w_hh0.T                                        # (H, H)
    b0 = (b_ih0 + b_hh0).reshape(1, H)
    wih1 = w_ih1.T                                        # (H, H)
    whh1 = w_hh1.T                                        # (H, H)
    b1 = (b_ih1 + b_hh1).reshape(1, H)
    wfc = w_fc.T                                          # (T*H, C), t-major rows
    bfc = b_fc.reshape(1, C)

    vmem = pl.BlockSpec(memory_space=pltpu.MemorySpace.VMEM)
    return pl.pallas_call(
        rnn_kernel,
        out_shape=jax.ShapeDtypeStruct((B, C), jnp.float32),
        in_specs=[vmem] * 9,
        out_specs=vmem,
    )(x, wih0, whh0, b0, wih1, whh1, b1, wfc, bfc)


def init_params(key):
    """Deterministic parameter init matching the PyTorch module's shapes."""
    H, D, T, C = HIDDEN, INPUT_SIZE, SEQ_LEN, N_CLASSES
    ks = jax.random.split(key, 10)
    s = 1.0 / np.sqrt(H)

    def u(k, shape):
        return jax.random.uniform(k, shape, jnp.float32, -s, s)

    w_ih0 = u(ks[0], (H, D))
    w_hh0 = u(ks[1], (H, H))
    b_ih0 = u(ks[2], (H,))
    b_hh0 = u(ks[3], (H,))
    w_ih1 = u(ks[4], (H, H))
    w_hh1 = u(ks[5], (H, H))
    b_ih1 = u(ks[6], (H,))
    b_hh1 = u(ks[7], (H,))
    w_fc = u(ks[8], (C, H * T))
    b_fc = u(ks[9], (C,))
    return (w_ih0, w_hh0, b_ih0, b_hh0,
            w_ih1, w_hh1, b_ih1, b_hh1,
            w_fc, b_fc)


def reference_forward(x, params):
    """Pure-JAX reference mirroring torch nn.RNN(tanh, 2 layers) + Linear."""
    (w_ih0, w_hh0, b_ih0, b_hh0,
     w_ih1, w_hh1, b_ih1, b_hh1,
     w_fc, b_fc) = params
    B, T, D = x.shape
    H = w_hh0.shape[0]
    h0 = jnp.zeros((B, H), jnp.float32)
    h1 = jnp.zeros((B, H), jnp.float32)
    outs = []
    for t in range(T):
        xt = x[:, t, :]
        h0 = jnp.tanh(xt @ w_ih0.T + b_ih0 + h0 @ w_hh0.T + b_hh0)
        h1 = jnp.tanh(h0 @ w_ih1.T + b_ih1 + h1 @ w_hh1.T + b_hh1)
        outs.append(h1)
    out = jnp.stack(outs, axis=1).reshape(B, -1)          # (B, T*H)
    return out @ w_fc.T + b_fc


if __name__ == "__main__":
    key = jax.random.PRNGKey(0)
    k_x, k_p = jax.random.split(key)
    x = jax.random.normal(k_x, (BATCH, SEQ_LEN, INPUT_SIZE), jnp.float32)
    params = init_params(k_p)

    out = jax.block_until_ready(rnn_forward(x, params))
    ref = jax.block_until_ready(reference_forward(x, params))

    assert out.shape == (BATCH, N_CLASSES)
    np.testing.assert_allclose(np.asarray(out), np.asarray(ref),
                               rtol=1e-5, atol=1e-5)
    print("KERNEL_OK")
</pallas_src>

<mosaic_0001>
module attributes {stable_mosaic.version = 11 : i64} {
  func.func @rnn_kernel(%arg0: memref<2x8x28xf32, #tpu.memory_space<vmem>>, %arg1: memref<28x32xf32, #tpu.memory_space<vmem>>, %arg2: memref<32x32xf32, #tpu.memory_space<vmem>>, %arg3: memref<1x32xf32, #tpu.memory_space<vmem>>, %arg4: memref<32x32xf32, #tpu.memory_space<vmem>>, %arg5: memref<32x32xf32, #tpu.memory_space<vmem>>, %arg6: memref<1x32xf32, #tpu.memory_space<vmem>>, %arg7: memref<256x10xf32, #tpu.memory_space<vmem>>, %arg8: memref<1x10xf32, #tpu.memory_space<vmem>>, %arg9: memref<2x10xf32, #tpu.memory_space<vmem>>) attributes {dimension_semantics = [], scalar_prefetch = 0 : i64, scratch_operands = 0 : i64, tpu.core_type = #tpu.core_type<tc>} {
    %c0 = arith.constant 0 : index
    %c0_0 = arith.constant 0 : index
    %c0_1 = arith.constant 0 : index
    %0 = vector.load %arg0[%c0, %c0_0, %c0_1] : memref<2x8x28xf32, #tpu.memory_space<vmem>>, vector<2x8x28xf32>
    %1 = vector.shape_cast %0 : vector<2x8x28xf32> to vector<16x28xf32>
    %c0_2 = arith.constant 0 : index
    %c0_3 = arith.constant 0 : index
    %2 = vector.load %arg1[%c0_2, %c0_3] : memref<28x32xf32, #tpu.memory_space<vmem>>, vector<28x32xf32>
    %cst = arith.constant dense<0.000000e+00> : vector<16x32xf32>
    %3 = tpu.matmul %1, %2, %cst {dimension_numbers = #tpu.dot_dimension_numbers<[1], [0], [0], [1], [0, 0, 1, 1], [], []>} : vector<16x28xf32>, vector<28x32xf32>, vector<16x32xf32> -> vector<16x32xf32>
    %c0_4 = arith.constant 0 : index
    %c0_5 = arith.constant 0 : index
    %4 = vector.load %arg3[%c0_4, %c0_5] : memref<1x32xf32, #tpu.memory_space<vmem>>, vector<1x32xf32>
    %5 = vector.broadcast %4 : vector<1x32xf32> to vector<16x32xf32>
    %6 = arith.addf %3, %5 : vector<16x32xf32>
    %7 = vector.shape_cast %6 : vector<16x32xf32> to vector<2x8x32xf32>
    %c0_6 = arith.constant 0 : index
    %c0_7 = arith.constant 0 : index
    %8 = vector.load %arg2[%c0_6, %c0_7] : memref<32x32xf32, #tpu.memory_space<vmem>>, vector<32x32xf32>
    %c0_8 = arith.constant 0 : index
    %c0_9 = arith.constant 0 : index
    %9 = vector.load %arg4[%c0_8, %c0_9] : memref<32x32xf32, #tpu.memory_space<vmem>>, vector<32x32xf32>
    %c0_10 = arith.constant 0 : index
    %c0_11 = arith.constant 0 : index
    %10 = vector.load %arg5[%c0_10, %c0_11] : memref<32x32xf32, #tpu.memory_space<vmem>>, vector<32x32xf32>
    %c0_12 = arith.constant 0 : index
    %c0_13 = arith.constant 0 : index
    %11 = vector.load %arg6[%c0_12, %c0_13] : memref<1x32xf32, #tpu.memory_space<vmem>>, vector<1x32xf32>
    %12 = vector.shape_cast %11 : vector<1x32xf32> to vector<1x32xf32>
    %13 = vector.broadcast %12 : vector<1x32xf32> to vector<2x32xf32>
    %cst_14 = arith.constant 0.000000e+00 : f32
    %14 = vector.broadcast %cst_14 : f32 to vector<2x32xf32>
    %cst_15 = arith.constant 0.000000e+00 : f32
    %15 = vector.broadcast %cst_15 : f32 to vector<2x32xf32>
    %cst_16 = arith.constant dense<0.000000e+00> : vector<2x32xf32>
    %16 = tpu.matmul %15, %10, %cst_16 {dimension_numbers = #tpu.dot_dimension_numbers<[1], [0], [0], [1], [0, 0, 1, 1], [], []>} : vector<2x32xf32>, vector<32x32xf32>, vector<2x32xf32> -> vector<2x32xf32>
    %17 = arith.addf %16, %13 : vector<2x32xf32>
    %18 = vector.extract_strided_slice %7 {offsets = [0, 0, 0], sizes = [2, 1, 32], strides = [1, 1, 1]} : vector<2x8x32xf32> to vector<2x1x32xf32>
    %19 = vector.shape_cast %18 : vector<2x1x32xf32> to vector<2x32xf32>
    %cst_17 = arith.constant dense<0.000000e+00> : vector<2x32xf32>
    %20 = tpu.matmul %14, %8, %cst_17 {dimension_numbers = #tpu.dot_dimension_numbers<[1], [0], [0], [1], [0, 0, 1, 1], [], []>} : vector<2x32xf32>, vector<32x32xf32>, vector<2x32xf32> -> vector<2x32xf32>
    %21 = arith.addf %19, %20 : vector<2x32xf32>
    %22 = math.tanh %21 : vector<2x32xf32>
    %cst_18 = arith.constant dense<0.000000e+00> : vector<2x32xf32>
    %23 = tpu.matmul %22, %9, %cst_18 {dimension_numbers = #tpu.dot_dimension_numbers<[1], [0], [0], [1], [0, 0, 1, 1], [], []>} : vector<2x32xf32>, vector<32x32xf32>, vector<2x32xf32> -> vector<2x32xf32>
    %24 = arith.addf %23, %17 : vector<2x32xf32>
    %25 = math.tanh %24 : vector<2x32xf32>
    %cst_19 = arith.constant dense<0.000000e+00> : vector<2x32xf32>
    %26 = tpu.matmul %25, %10, %cst_19 {dimension_numbers = #tpu.dot_dimension_numbers<[1], [0], [0], [1], [0, 0, 1, 1], [], []>} : vector<2x32xf32>, vector<32x32xf32>, vector<2x32xf32> -> vector<2x32xf32>
    %27 = arith.addf %26, %13 : vector<2x32xf32>
    %28 = vector.extract_strided_slice %7 {offsets = [0, 1, 0], sizes = [2, 1, 32], strides = [1, 1, 1]} : vector<2x8x32xf32> to vector<2x1x32xf32>
    %29 = vector.shape_cast %28 : vector<2x1x32xf32> to vector<2x32xf32>
    %cst_20 = arith.constant dense<0.000000e+00> : vector<2x32xf32>
    %30 = tpu.matmul %22, %8, %cst_20 {dimension_numbers = #tpu.dot_dimension_numbers<[1], [0], [0], [1], [0, 0, 1, 1], [], []>} : vector<2x32xf32>, vector<32x32xf32>, vector<2x32xf32> -> vector<2x32xf32>
    %31 = arith.addf %29, %30 : vector<2x32xf32>
    %32 = math.tanh %31 : vector<2x32xf32>
    %cst_21 = arith.constant dense<0.000000e+00> : vector<2x32xf32>
    %33 = tpu.matmul %32, %9, %cst_21 {dimension_numbers = #tpu.dot_dimension_numbers<[1], [0], [0], [1], [0, 0, 1, 1], [], []>} : vector<2x32xf32>, vector<32x32xf32>, vector<2x32xf32> -> vector<2x32xf32>
    %34 = arith.addf %33, %27 : vector<2x32xf32>
    %35 = math.tanh %34 : vector<2x32xf32>
    %cst_22 = arith.constant dense<0.000000e+00> : vector<2x32xf32>
    %36 = tpu.matmul %35, %10, %cst_22 {dimension_numbers = #tpu.dot_dimension_numbers<[1], [0], [0], [1], [0, 0, 1, 1], [], []>} : vector<2x32xf32>, vector<32x32xf32>, vector<2x32xf32> -> vector<2x32xf32>
    %37 = arith.addf %36, %13 : vector<2x32xf32>
    %38 = vector.extract_strided_slice %7 {offsets = [0, 2, 0], sizes = [2, 1, 32], strides = [1, 1, 1]} : vector<2x8x32xf32> to vector<2x1x32xf32>
    %39 = vector.shape_cast %38 : vector<2x1x32xf32> to vector<2x32xf32>
    %cst_23 = arith.constant dense<0.000000e+00> : vector<2x32xf32>
    %40 = tpu.matmul %32, %8, %cst_23 {dimension_numbers = #tpu.dot_dimension_numbers<[1], [0], [0], [1], [0, 0, 1, 1], [], []>} : vector<2x32xf32>, vector<32x32xf32>, vector<2x32xf32> -> vector<2x32xf32>
    %41 = arith.addf %39, %40 : vector<2x32xf32>
    %42 = math.tanh %41 : vector<2x32xf32>
    %cst_24 = arith.constant dense<0.000000e+00> : vector<2x32xf32>
    %43 = tpu.matmul %42, %9, %cst_24 {dimension_numbers = #tpu.dot_dimension_numbers<[1], [0], [0], [1], [0, 0, 1, 1], [], []>} : vector<2x32xf32>, vector<32x32xf32>, vector<2x32xf32> -> vector<2x32xf32>
    %44 = arith.addf %43, %37 : vector<2x32xf32>
    %45 = math.tanh %44 : vector<2x32xf32>
    %cst_25 = arith.constant dense<0.000000e+00> : vector<2x32xf32>
    %46 = tpu.matmul %45, %10, %cst_25 {dimension_numbers = #tpu.dot_dimension_numbers<[1], [0], [0], [1], [0, 0, 1, 1], [], []>} : vector<2x32xf32>, vector<32x32xf32>, vector<2x32xf32> -> vector<2x32xf32>
    %47 = arith.addf %46, %13 : vector<2x32xf32>
    %48 = vector.extract_strided_slice %7 {offsets = [0, 3, 0], sizes = [2, 1, 32], strides = [1, 1, 1]} : vector<2x8x32xf32> to vector<2x1x32xf32>
    %49 = vector.shape_cast %48 : vector<2x1x32xf32> to vector<2x32xf32>
    %cst_26 = arith.constant dense<0.000000e+00> : vector<2x32xf32>
    %50 = tpu.matmul %42, %8, %cst_26 {dimension_numbers = #tpu.dot_dimension_numbers<[1], [0], [0], [1], [0, 0, 1, 1], [], []>} : vector<2x32xf32>, vector<32x32xf32>, vector<2x32xf32> -> vector<2x32xf32>
    %51 = arith.addf %49, %50 : vector<2x32xf32>
    %52 = math.tanh %51 : vector<2x32xf32>
    %cst_27 = arith.constant dense<0.000000e+00> : vector<2x32xf32>
    %53 = tpu.matmul %52, %9, %cst_27 {dimension_numbers = #tpu.dot_dimension_numbers<[1], [0], [0], [1], [0, 0, 1, 1], [], []>} : vector<2x32xf32>, vector<32x32xf32>, vector<2x32xf32> -> vector<2x32xf32>
    %54 = arith.addf %53, %47 : vector<2x32xf32>
    %55 = math.tanh %54 : vector<2x32xf32>
    %cst_28 = arith.constant dense<0.000000e+00> : vector<2x32xf32>
    %56 = tpu.matmul %55, %10, %cst_28 {dimension_numbers = #tpu.dot_dimension_numbers<[1], [0], [0], [1], [0, 0, 1, 1], [], []>} : vector<2x32xf32>, vector<32x32xf32>, vector<2x32xf32> -> vector<2x32xf32>
    %57 = arith.addf %56, %13 : vector<2x32xf32>
    %58 = vector.extract_strided_slice %7 {offsets = [0, 4, 0], sizes = [2, 1, 32], strides = [1, 1, 1]} : vector<2x8x32xf32> to vector<2x1x32xf32>
    %59 = vector.shape_cast %58 : vector<2x1x32xf32> to vector<2x32xf32>
    %cst_29 = arith.constant dense<0.000000e+00> : vector<2x32xf32>
    %60 = tpu.matmul %52, %8, %cst_29 {dimension_numbers = #tpu.dot_dimension_numbers<[1], [0], [0], [1], [0, 0, 1, 1], [], []>} : vector<2x32xf32>, vector<32x32xf32>, vector<2x32xf32> -> vector<2x32xf32>
    %61 = arith.addf %59, %60 : vector<2x32xf32>
    %62 = math.tanh %61 : vector<2x32xf32>
    %cst_30 = arith.constant dense<0.000000e+00> : vector<2x32xf32>
    %63 = tpu.matmul %62, %9, %cst_30 {dimension_numbers = #tpu.dot_dimension_numbers<[1], [0], [0], [1], [0, 0, 1, 1], [], []>} : vector<2x32xf32>, vector<32x32xf32>, vector<2x32xf32> -> vector<2x32xf32>
    %64 = arith.addf %63, %57 : vector<2x32xf32>
    %65 = math.tanh %64 : vector<2x32xf32>
    %cst_31 = arith.constant dense<0.000000e+00> : vector<2x32xf32>
    %66 = tpu.matmul %65, %10, %cst_31 {dimension_numbers = #tpu.dot_dimension_numbers<[1], [0], [0], [1], [0, 0, 1, 1], [], []>} : vector<2x32xf32>, vector<32x32xf32>, vector<2x32xf32> -> vector<2x32xf32>
    %67 = arith.addf %66, %13 : vector<2x32xf32>
    %68 = vector.extract_strided_slice %7 {offsets = [0, 5, 0], sizes = [2, 1, 32], strides = [1, 1, 1]} : vector<2x8x32xf32> to vector<2x1x32xf32>
    %69 = vector.shape_cast %68 : vector<2x1x32xf32> to vector<2x32xf32>
    %cst_32 = arith.constant dense<0.000000e+00> : vector<2x32xf32>
    %70 = tpu.matmul %62, %8, %cst_32 {dimension_numbers = #tpu.dot_dimension_numbers<[1], [0], [0], [1], [0, 0, 1, 1], [], []>} : vector<2x32xf32>, vector<32x32xf32>, vector<2x32xf32> -> vector<2x32xf32>
    %71 = arith.addf %69, %70 : vector<2x32xf32>
    %72 = math.tanh %71 : vector<2x32xf32>
    %cst_33 = arith.constant dense<0.000000e+00> : vector<2x32xf32>
    %73 = tpu.matmul %72, %9, %cst_33 {dimension_numbers = #tpu.dot_dimension_numbers<[1], [0], [0], [1], [0, 0, 1, 1], [], []>} : vector<2x32xf32>, vector<32x32xf32>, vector<2x32xf32> -> vector<2x32xf32>
    %74 = arith.addf %73, %67 : vector<2x32xf32>
    %75 = math.tanh %74 : vector<2x32xf32>
    %cst_34 = arith.constant dense<0.000000e+00> : vector<2x32xf32>
    %76 = tpu.matmul %75, %10, %cst_34 {dimension_numbers = #tpu.dot_dimension_numbers<[1], [0], [0], [1], [0, 0, 1, 1], [], []>} : vector<2x32xf32>, vector<32x32xf32>, vector<2x32xf32> -> vector<2x32xf32>
    %77 = arith.addf %76, %13 : vector<2x32xf32>
    %78 = vector.extract_strided_slice %7 {offsets = [0, 6, 0], sizes = [2, 1, 32], strides = [1, 1, 1]} : vector<2x8x32xf32> to vector<2x1x32xf32>
    %79 = vector.shape_cast %78 : vector<2x1x32xf32> to vector<2x32xf32>
    %cst_35 = arith.constant dense<0.000000e+00> : vector<2x32xf32>
    %80 = tpu.matmul %72, %8, %cst_35 {dimension_numbers = #tpu.dot_dimension_numbers<[1], [0], [0], [1], [0, 0, 1, 1], [], []>} : vector<2x32xf32>, vector<32x32xf32>, vector<2x32xf32> -> vector<2x32xf32>
    %81 = arith.addf %79, %80 : vector<2x32xf32>
    %82 = math.tanh %81 : vector<2x32xf32>
    %cst_36 = arith.constant dense<0.000000e+00> : vector<2x32xf32>
    %83 = tpu.matmul %82, %9, %cst_36 {dimension_numbers = #tpu.dot_dimension_numbers<[1], [0], [0], [1], [0, 0, 1, 1], [], []>} : vector<2x32xf32>, vector<32x32xf32>, vector<2x32xf32> -> vector<2x32xf32>
    %84 = arith.addf %83, %77 : vector<2x32xf32>
    %85 = math.tanh %84 : vector<2x32xf32>
    %cst_37 = arith.constant dense<0.000000e+00> : vector<2x32xf32>
    %86 = tpu.matmul %85, %10, %cst_37 {dimension_numbers = #tpu.dot_dimension_numbers<[1], [0], [0], [1], [0, 0, 1, 1], [], []>} : vector<2x32xf32>, vector<32x32xf32>, vector<2x32xf32> -> vector<2x32xf32>
    %87 = arith.addf %86, %13 : vector<2x32xf32>
    %88 = vector.extract_strided_slice %7 {offsets = [0, 7, 0], sizes = [2, 1, 32], strides = [1, 1, 1]} : vector<2x8x32xf32> to vector<2x1x32xf32>
    %89 = vector.shape_cast %88 : vector<2x1x32xf32> to vector<2x32xf32>
    %cst_38 = arith.constant dense<0.000000e+00> : vector<2x32xf32>
    %90 = tpu.matmul %82, %8, %cst_38 {dimension_numbers = #tpu.dot_dimension_numbers<[1], [0], [0], [1], [0, 0, 1, 1], [], []>} : vector<2x32xf32>, vector<32x32xf32>, vector<2x32xf32> -> vector<2x32xf32>
    %91 = arith.addf %89, %90 : vector<2x32xf32>
    %92 = math.tanh %91 : vector<2x32xf32>
    %cst_39 = arith.constant dense<0.000000e+00> : vector<2x32xf32>
    %93 = tpu.matmul %92, %9, %cst_39 {dimension_numbers = #tpu.dot_dimension_numbers<[1], [0], [0], [1], [0, 0, 1, 1], [], []>} : vector<2x32xf32>, vector<32x32xf32>, vector<2x32xf32> -> vector<2x32xf32>
    %94 = arith.addf %93, %87 : vector<2x32xf32>
    %95 = math.tanh %94 : vector<2x32xf32>
    %96 = tpu.concatenate %25, %35, %45, %55, %65, %75, %85, %95 in 1 : vector<2x32xf32>, vector<2x32xf32>, vector<2x32xf32>, vector<2x32xf32>, vector<2x32xf32>, vector<2x32xf32>, vector<2x32xf32>, vector<2x32xf32> -> vector<2x256xf32>
    %c0_40 = arith.constant 0 : index
    %c0_41 = arith.constant 0 : index
    %97 = vector.load %arg7[%c0_40, %c0_41] : memref<256x10xf32, #tpu.memory_space<vmem>>, vector<256x10xf32>
    %cst_42 = arith.constant dense<0.000000e+00> : vector<2x10xf32>
    %98 = tpu.matmul %96, %97, %cst_42 {dimension_numbers = #tpu.dot_dimension_numbers<[1], [0], [0], [1], [0, 0, 1, 1], [], []>} : vector<2x256xf32>, vector<256x10xf32>, vector<2x10xf32> -> vector<2x10xf32>
    %c0_43 = arith.constant 0 : index
    %c0_44 = arith.constant 0 : index
    %99 = vector.load %arg8[%c0_43, %c0_44] : memref<1x10xf32, #tpu.memory_space<vmem>>, vector<1x10xf32>
    %100 = vector.broadcast %99 : vector<1x10xf32> to vector<2x10xf32>
    %101 = arith.addf %98, %100 : vector<2x10xf32>
    %c0_45 = arith.constant 0 : index
    %c0_46 = arith.constant 0 : index
    %102 = vector.load %arg9[%c0_45, %c0_46] : memref<2x10xf32, #tpu.memory_space<vmem>>, vector<2x10xf32>
    tpu.vector_store %arg9[%c0_45, %c0_46], %101 {strides = array<i32>} : memref<2x10xf32, #tpu.memory_space<vmem>>, vector<2x10xf32>,
    return
  }
}

</mosaic_0001>

<bundles_post_ra>
// kernel: tpu_custom_call.1
= control target key start
LH: loop header
LB: loop body
LE: loop exit
PB: predicated region body
PF: predicated region fallthrough
CT: control target
= control target key end

     0   :  { %vm53_vm0 = vcmask 1043456   ;;  %vm46_vm1 = vcmask 228352   ;;  %v2696_v4 = vmov 0.0   ;;  %vm2697_vm2 = vmmov 0   ;;  %s3264_s0 = inlined_call_operand.vmem [shape: f32[2,8,28], index: 0, kind: input, shape index: {}]   ;;  %s3265_s1 = inlined_call_operand.vmem [shape: f32[28,32], index: 1, kind: input, shape index: {}]   ;;  %s3266_s2 = inlined_call_operand.vmem [shape: f32[32,32], index: 2, kind: input, shape index: {}]   ;;  %s3267_s3 = inlined_call_operand.vmem [shape: f32[1,32], index: 3, kind: input, shape index: {}]   ;;  %s3268_s4 = inlined_call_operand.vmem [shape: f32[32,32], index: 4, kind: input, shape index: {}]   ;;  %s3269_s5 = inlined_call_operand.vmem [shape: f32[32,32], index: 5, kind: input, shape index: {}]   ;;  %s3270_s6 = inlined_call_operand.vmem [shape: f32[1,32], index: 6, kind: input, shape index: {}]   ;;  %s3271_s7 = inlined_call_operand.vmem [shape: f32[256,10], index: 7, kind: input, shape index: {}]   ;;  %s3272_s8 = inlined_call_operand.vmem [shape: f32[1,10], index: 8, kind: input, shape index: {}]   ;;  %s3273_s9 = inlined_call_operand.hbm [shape: f32[2,10], index: 9, kind: output, shape index: {}]  }
   0x1   :  { %v38_v0 = vld [vmem:[%s3265_s1 + $0x18] sm:$0xf]  ;;  %v37_v1 = vld [vmem:[%s3265_s1 + $0x10] sm:$0xff]  ;;  %v33_v2 = vld [vmem:[%s3264_s0] sm:$0xff]  ;;  %2363 = vmatprep.subr.mxu1 %v2696_v4  ;;  %2371 = vmatprep.mubr.msk.f32.mxu1 %vm2697_vm2, %v2696_v4 }
   0x2   :  { %2330 = vmatprep.subr.msk.mxu0 %vm53_vm0, %v38_v0  ;;  %v36_v3 = vld [vmem:[%s3265_s1 + $0x8] sm:$0xff]  ;;  %2338 = vmatprep.mubr.msk.f32.mxu0 %vm46_vm1, %v33_v2  ;;  %v35_v5 = vld [vmem:[%s3265_s1] sm:$0xff] }
   0x3   :  { %2331 = vmatpush3.msk.msra.mxu0 %vm53_vm0, %v38_v0 }
   0x4   :  { %2332 = vmatprep.subr.mxu0 %v37_v1 }
   0x5   :  { %2333 = vmatpush3.msra.mxu0 %v37_v1 }
   0x6   :  { %14 = vsyncpa [#allocation3], 0  ;;  %2334 = vmatprep.subr.mxu0 %v36_v3  ;;  %v34_v6 = vld [vmem:[%s3264_s0 + $0x8] sm:$0xff]  ;;  %v2777_v7 = vld [vmem:[%s3269_s5 + $0x18] sm:$0xff]  ;;  %vm306_vm3 = vcmask 1041409   ;;  %vm151_vm4 = vcmask 261120  }
   0x7   :  { %2335 = vmatpush3.msra.mxu0 %v36_v3  ;;  %v2784_v8 = vld [vmem:[%s3269_s5 + $0x10] sm:$0xff]  ;;  %v2793_v9 = vld [vmem:[%s3269_s5 + $0x8] sm:$0xff]  ;;  %v2800_v10 = vld [vmem:[%s3269_s5] sm:$0xff]  ;;  %s2699_s22 = smov 64   ;;  %s2700_s29 = smov 96   ;;  %vm2009_vm5 = vcmask 523264  }
   0x8   :  { %2336 = vmatprep.subr.mxu0 %v35_v5  ;;  %v2807_v11 = vld [vmem:[%s3266_s2 + $0x18] sm:$0xff]  ;;  %v2815_v12 = vld [vmem:[%s3266_s2 + $0x10] sm:$0xff]  ;;  %v2824_v13 = vld [vmem:[%s3266_s2 + $0x8] sm:$0xff]  ;;  %vm2011_vm6 = vcmask 785408   ;;  %s2701_s5 = smov [#allocation2]   ;;  %vm2125_vm7 = vcmask 74752  }
   0x9   :  { %2337 = vmatpush3.msra.mxu0 %v35_v5  ;;  %v2831_v14 = vld [vmem:[%s3266_s2] sm:$0xff]  ;;  %v2851_v15 = vld [vmem:[%s3268_s4 + $0x18] sm:$0xff]  ;;  %v2858_v16 = vld [vmem:[%s3268_s4 + $0x10] sm:$0xff]  ;;  %s2133_s10 = sshll.u32 %s2701_s5, 4  ;;  %s2134_s10 = int_to_ptr.vmem [resolvable:$true] %s2133_s10 }
   0xa   :  { %2339 = vmatmul.mubr.msk.f32.vlgmr.msra.gmra.mxu0 %vm46_vm1, %v34_v6  ;;  %2341 = vmatprep.subr.mxu0 %v2696_v4  ;;  %v2865_v17 = vld [vmem:[%s3268_s4 + $0x8] sm:$0xff]  ;;  %v2872_v18 = vld [vmem:[%s3268_s4] sm:$0xff]  ;;  %s2674_s11 = scalar_lea.vmem %s2134_s10, 32  ;;  %p2679_p1 = scmp.lt.s32.totalorder %s2134_s10, %s2134_s10 }
   0xb   :  { %2342 = vmatpush3.msra.mxu0 %v2777_v7  ;;  %2349 = vmatprep.mubr.msk.f32.mxu0 %vm2697_vm2, %v2696_v4  ;;  %v2141_v23 = vld [vmem:[%s3267_s3] ss:$0 sm:$0xff]  ;;  %p2675_p0 = scmp.ne.s32.totalorder %s2134_s10, %s2674_s11  ;;  %p2680_p2 = scmp.lt.s32.totalorder %s2674_s11, %s2674_s11 }
   0xc   :  { %2343 = vmatprep.subr.mxu0 %v2696_v4  ;;  %2364 = vmatpush3.msra.mxu1 %v2851_v15  ;;  %v2911_v35 = vld [vmem:[%s3270_s6] ss:$0 sm:$0xff]  ;;  %s2698_s6 = smov 32  }
   0xd   :  { %2344 = vmatpush3.msra.mxu0 %v2784_v8  ;;  %2365 = vmatprep.subr.mxu1 %v2696_v4  ;;  %p2681_p3 = por %p2680_p2, %p2679_p1 }
   0xe   :  { %2345 = vmatprep.subr.mxu0 %v2696_v4  ;;  %2366 = vmatpush3.msra.mxu1 %v2858_v16 }
   0xf   :  { %2346 = vmatpush3.msra.mxu0 %v2793_v9  ;;  %2367 = vmatprep.subr.mxu1 %v2696_v4  ;;  %p2682_p4 = pnand %p2681_p3, %p2675_p0 }
  0x10   :  { %2347 = vmatprep.subr.mxu0 %v2696_v4  ;;  %2368 = vmatpush3.msra.mxu1 %v2865_v17 }
  0x11   :  { %2348 = vmatpush3.msra.mxu0 %v2800_v10  ;;  %2369 = vmatprep.subr.mxu1 %v2696_v4 }
  0x12   :  { %2350 = vmatmul.mubr.f32.vlgmr.msra.gmra.mxu0 %v2696_v4  ;;  %2352 = vmatprep.subr.mxu0 %v2696_v4 }
  0x13   :  { %2353 = vmatpush3.msra.mxu0 %v2807_v11  ;;  %2360 = vmatprep.mubr.msk.f32.mxu0 %vm2697_vm2, %v2696_v4 }
  0x14   :  { %2354 = vmatprep.subr.mxu0 %v2696_v4  ;;  %2370 = vmatpush3.msra.mxu1 %v2872_v18 }
  0x15   :  { %2355 = vmatpush3.msra.mxu0 %v2815_v12  ;;  %2385 = vmatprep.subr.mxu1 %v2696_v4 }
  0x16   :  { %2356 = vmatprep.subr.mxu0 %v2696_v4 }
  0x17   :  { %2357 = vmatpush3.msra.mxu0 %v2824_v13 }
  0x18   :  { %2358 = vmatprep.subr.mxu0 %v2696_v4 }
  0x19   :  { %2359 = vmatpush3.msra.mxu0 %v2831_v14 }
  0x1a   :  { %2361 = vmatmul.mubr.f32.vlgmr.msra.gmra.mxu0 %v2696_v4  ;;  %2374 = vmatprep.subr.mxu0 %v2696_v4 }
  0x1b   :  { %2375 = vmatpush3.msra.mxu0 %v2777_v7  ;;  %2382 = vmatprep.mubr.msk.f32.mxu0 %vm2697_vm2, %v2696_v4 }
  0x1c   :  { %2376 = vmatprep.subr.mxu0 %v2696_v4 }
  0x1d   :  { %2377 = vmatpush3.msra.mxu0 %v2784_v8 }
  0x1e   :  { %2378 = vmatprep.subr.mxu0 %v2696_v4 }
  0x1f   :  { %2379 = vmatpush3.msra.mxu0 %v2793_v9 }
  0x20   :  { %2380 = vmatprep.subr.mxu0 %v2696_v4 }
  0x21   :  { %2381 = vmatpush3.msra.mxu0 %v2800_v10 }
  0x22   :  { %2396 = vmatprep.subr.mxu0 %v2696_v4 }
  0xca   :  { %v2340_v19 = vpop.f32.mrf.mxu0 }
  0xcb   :  { %v2879_v25 = vadd.f32 %v2340_v19, %v2141_v23 }
  0xcc   :  { %v123_v20 = vpop.f32.mrf.mxu0 }
  0xcd   :  { %v2881_v26 = vadd.f32 %v2141_v23, %v123_v20 }
  0xd2   :  { %v221_v21 = vpop.f32.mrf.mxu0 }
  0xd3   :  { %v222_v36 = vadd.f32 %v2911_v35, %v221_v21 }
  0xd4   :  { %v2351_v22 = vpop.f32.mrf.mxu0 }
  0xda   :  { %v291_v24 = vpop.f32.mrf.mxu0 }
  0xdb   :  { %v296_v27 = vrot.slane %v291_v24, 1  ;;  %v299_v29 = vadd.f32 %v291_v24, %v2881_v26 }
  0xdc   :  { %v2362_v28 = vpop.f32.mrf.mxu0 }
  0xdd   :  { %v300_v30 = vadd.f32 %v296_v27, %v2879_v25 }
  0xdf   :  { %2626 = vtanh.f32 %v300_v30 }
  0xe0   :  { %2628 = vtanh.f32 %v299_v29 }
  0xec   :  { %v2627_v31 = vpop.eup %2626 }
  0xed   :  { %v305_v32 = vrot.slane %v2627_v31, 7  ;;  %v2629_v33 = vpop.eup %2628 }
  0xef   :  { %v307_v34 = vsel %vm306_vm3, %v305_v32, %v2629_v33 }
  0xf0   :  { %2372 = vmatmul.mubr.msk.f32.vlgmr.msra.gmra.mxu1 %vm151_vm4, %v307_v34 }
  0xf1   :  { %2386 = vmatpush3.msra.mxu1 %v2807_v11  ;;  %2393 = vmatprep.mubr.msk.f32.mxu1 %vm2697_vm2, %v2696_v4 }
  0xf2   :  { %2387 = vmatprep.subr.mxu1 %v2696_v4 }
  0xf3   :  { %2388 = vmatpush3.msra.mxu1 %v2815_v12 }
  0xf4   :  { %2389 = vmatprep.subr.mxu1 %v2696_v4 }
  0xf5   :  { %2390 = vmatpush3.msra.mxu1 %v2824_v13 }
  0xf6   :  { %2391 = vmatprep.subr.mxu1 %v2696_v4 }
  0xf7   :  { %2392 = vmatpush3.msra.mxu1 %v2831_v14 }
  0xf8   :  { %2394 = vmatmul.mubr.msk.f32.vlgmr.msra.gmra.mxu1 %vm151_vm4, %v307_v34  ;;  %2407 = vmatprep.subr.mxu1 %v2696_v4 }
  0xf9   :  { %2408 = vmatpush3.msra.mxu1 %v2777_v7  ;;  %2415 = vmatprep.mubr.msk.f32.mxu1 %vm2697_vm2, %v2696_v4 }
  0xfa   :  { %2409 = vmatprep.subr.mxu1 %v2696_v4 }
  0xfb   :  { %2410 = vmatpush3.msra.mxu1 %v2784_v8 }
  0xfc   :  { %2411 = vmatprep.subr.mxu1 %v2696_v4 }
  0xfd   :  { %2412 = vmatpush3.msra.mxu1 %v2793_v9 }
  0xfe   :  { %2413 = vmatprep.subr.mxu1 %v2696_v4 }
  0xff   :  { %2414 = vmatpush3.msra.mxu1 %v2800_v10 }
 0x100   :  { %2429 = vmatprep.subr.mxu1 %v2696_v4 }
 0x1b0   :  { %v376_v37 = vpop.f32.mrf.mxu1 }
 0x1b1   :  { %v377_v38 = vadd.f32 %v376_v37, %v222_v36 }
 0x1b2   :  { %v2373_v39 = vpop.f32.mrf.mxu1 }
 0x1b3   :  { %2630 = vtanh.f32 %v377_v38 }
 0x1b8   :  { %v520_v40 = vpop.f32.mrf.mxu1 }
 0x1b9   :  { %v525_v41 = vrot.slane %v520_v40, 7  ;;  %v529_v44 = vadd.f32 %v520_v40, %v2879_v25 }
 0x1ba   :  { %v2395_v42 = vpop.f32.mrf.mxu1 }
 0x1bb   :  { %v528_v43 = vadd.f32 %v525_v41, %v2881_v26 }
 0x1bd   :  { %2632 = vtanh.f32 %v528_v43 }
 0x1be   :  { %2634 = vtanh.f32 %v529_v44 }
 0x1c0   :  { %v2916_v45 = vpop.eup %2630 }
 0x1c1   :  { %2383 = vmatmul.mubr.msk.f32.vlgmr.msra.gmra.mxu0 %vm151_vm4, %v2916_v45 }
 0x1c2   :  { %2397 = vmatpush3.msra.mxu0 %v2851_v15  ;;  %2404 = vmatprep.mubr.msk.f32.mxu0 %vm2697_vm2, %v2696_v4 }
 0x1c3   :  { %2398 = vmatprep.subr.mxu0 %v2696_v4 }
 0x1c4   :  { %2399 = vmatpush3.msra.mxu0 %v2858_v16 }
 0x1c5   :  { %2400 = vmatprep.subr.mxu0 %v2696_v4 }
 0x1c6   :  { %2401 = vmatpush3.msra.mxu0 %v2865_v17 }
 0x1c7   :  { %2402 = vmatprep.subr.mxu0 %v2696_v4 }
 0x1c8   :  { %2403 = vmatpush3.msra.mxu0 %v2872_v18 }
 0x1c9   :  { %2418 = vmatprep.subr.mxu0 %v2696_v4 }
 0x1ca   :  { %v2633_v46 = vpop.eup %2632 }
 0x1cb   :  { %v534_v47 = vrot.slane %v2633_v46, 1  ;;  %v2635_v48 = vpop.eup %2634 }
 0x1cd   :  { %v535_v49 = vsel %vm306_vm3, %v2635_v48, %v534_v47 }
 0x1ce   :  { %2405 = vmatmul.mubr.msk.f32.vlgmr.msra.gmra.mxu0 %vm151_vm4, %v535_v49 }
 0x1cf   :  { %2419 = vmatpush3.msra.mxu0 %v2807_v11  ;;  %2426 = vmatprep.mubr.msk.f32.mxu0 %vm2697_vm2, %v2696_v4 }
 0x1d0   :  { %2420 = vmatprep.subr.mxu0 %v2696_v4 }
 0x1d1   :  { %2421 = vmatpush3.msra.mxu0 %v2815_v12 }
 0x1d2   :  { %2422 = vmatprep.subr.mxu0 %v2696_v4 }
 0x1d3   :  { %2423 = vmatpush3.msra.mxu0 %v2824_v13 }
 0x1d4   :  { %2424 = vmatprep.subr.mxu0 %v2696_v4 }
 0x1d5   :  { %2425 = vmatpush3.msra.mxu0 %v2831_v14 }
 0x1d6   :  { %2427 = vmatmul.mubr.msk.f32.vlgmr.msra.gmra.mxu0 %vm151_vm4, %v535_v49  ;;  %2440 = vmatprep.subr.mxu0 %v2696_v4 }
 0x1d7   :  { %2441 = vmatpush3.msra.mxu0 %v2777_v7  ;;  %2448 = vmatprep.mubr.msk.f32.mxu0 %vm2697_vm2, %v2696_v4 }
 0x1d8   :  { %2442 = vmatprep.subr.mxu0 %v2696_v4 }
 0x1d9   :  { %2443 = vmatpush3.msra.mxu0 %v2784_v8 }
 0x1da   :  { %2444 = vmatprep.subr.mxu0 %v2696_v4 }
 0x1db   :  { %2445 = vmatpush3.msra.mxu0 %v2793_v9 }
 0x1dc   :  { %2446 = vmatprep.subr.mxu0 %v2696_v4 }
 0x1dd   :  { %2447 = vmatpush3.msra.mxu0 %v2800_v10 }
 0x1de   :  { %2462 = vmatprep.subr.mxu0 %v2696_v4 }
 0x281   :  { %v450_v50 = vpop.f32.mrf.mxu0 }
 0x282   :  { %v451_v52 = vadd.f32 %v2911_v35, %v450_v50 }
 0x283   :  { %v2384_v51 = vpop.f32.mrf.mxu0 }
 0x28e   :  { %v604_v53 = vpop.f32.mrf.mxu0 }
 0x28f   :  { %v605_v54 = vadd.f32 %v604_v53, %v451_v52 }
 0x290   :  { %v2406_v55 = vpop.f32.mrf.mxu0 }
 0x291   :  { %2636 = vtanh.f32 %v605_v54 }
 0x296   :  { %v748_v56 = vpop.f32.mrf.mxu0 }
 0x297   :  { %v753_v57 = vrot.slane %v748_v56, 6  ;;  %v754_v58 = vrot.slane %v748_v56, 7 }
 0x298   :  { %v2428_v59 = vpop.f32.mrf.mxu0 }
 0x299   :  { %v757_v60 = vadd.f32 %v753_v57, %v2881_v26  ;;  %v758_v61 = vadd.f32 %v754_v58, %v2879_v25 }
 0x29b   :  { %2638 = vtanh.f32 %v757_v60 }
 0x29c   :  { %2640 = vtanh.f32 %v758_v61 }
 0x29e   :  { %v2956_v62 = vpop.eup %2636 }
 0x29f   :  { %2416 = vmatmul.mubr.msk.f32.vlgmr.msra.gmra.mxu1 %vm151_vm4, %v2956_v62 }
 0x2a0   :  { %2430 = vmatpush3.msra.mxu1 %v2851_v15  ;;  %2437 = vmatprep.mubr.msk.f32.mxu1 %vm2697_vm2, %v2696_v4 }
 0x2a1   :  { %2431 = vmatprep.subr.mxu1 %v2696_v4 }
 0x2a2   :  { %2432 = vmatpush3.msra.mxu1 %v2858_v16 }
 0x2a3   :  { %2433 = vmatprep.subr.mxu1 %v2696_v4 }
 0x2a4   :  { %2434 = vmatpush3.msra.mxu1 %v2865_v17 }
 0x2a5   :  { %2435 = vmatprep.subr.mxu1 %v2696_v4 }
 0x2a6   :  { %2436 = vmatpush3.msra.mxu1 %v2872_v18 }
 0x2a7   :  { %2451 = vmatprep.subr.mxu1 %v2696_v4 }
 0x2a8   :  { %v2639_v63 = vpop.eup %2638 }
 0x2a9   :  { %v2641_v0 = vpop.eup %2640  ;;  %v763_v1 = vrot.slane %v2639_v63, 2 }
 0x2aa   :  { %v764_v2 = vrot.slane %v2641_v0, 1 }
 0x2ac   :  { %v765_v3 = vsel %vm306_vm3, %v764_v2, %v763_v1 }
 0x2ad   :  { %2438 = vmatmul.mubr.msk.f32.vlgmr.msra.gmra.mxu1 %vm151_vm4, %v765_v3 }
 0x2ae   :  { %2452 = vmatpush3.msra.mxu1 %v2807_v11  ;;  %2459 = vmatprep.mubr.msk.f32.mxu1 %vm2697_vm2, %v2696_v4 }
 0x2af   :  { %2453 = vmatprep.subr.mxu1 %v2696_v4 }
 0x2b0   :  { %2454 = vmatpush3.msra.mxu1 %v2815_v12 }
 0x2b1   :  { %2455 = vmatprep.subr.mxu1 %v2696_v4 }
 0x2b2   :  { %2456 = vmatpush3.msra.mxu1 %v2824_v13 }
 0x2b3   :  { %2457 = vmatprep.subr.mxu1 %v2696_v4 }
 0x2b4   :  { %2458 = vmatpush3.msra.mxu1 %v2831_v14 }
 0x2b5   :  { %2460 = vmatmul.mubr.msk.f32.vlgmr.msra.gmra.mxu1 %vm151_vm4, %v765_v3  ;;  %2473 = vmatprep.subr.mxu1 %v2696_v4 }
 0x2b6   :  { %2474 = vmatpush3.msra.mxu1 %v2777_v7  ;;  %2481 = vmatprep.mubr.msk.f32.mxu1 %vm2697_vm2, %v2696_v4 }
 0x2b7   :  { %2475 = vmatprep.subr.mxu1 %v2696_v4 }
 0x2b8   :  { %2476 = vmatpush3.msra.mxu1 %v2784_v8 }
 0x2b9   :  { %2477 = vmatprep.subr.mxu1 %v2696_v4 }
 0x2ba   :  { %2478 = vmatpush3.msra.mxu1 %v2793_v9 }
 0x2bb   :  { %2479 = vmatprep.subr.mxu1 %v2696_v4 }
 0x2bc   :  { %2480 = vmatpush3.msra.mxu1 %v2800_v10 }
 0x2bd   :  { %2495 = vmatprep.subr.mxu1 %v2696_v4 }
 0x35f   :  { %v678_v5 = vpop.f32.mrf.mxu1 }
 0x360   :  { %v679_v19 = vadd.f32 %v2911_v35, %v678_v5 }
 0x361   :  { %v2417_v6 = vpop.f32.mrf.mxu1 }
 0x36d   :  { %v834_v20 = vpop.f32.mrf.mxu1 }
 0x36e   :  { %v835_v21 = vadd.f32 %v834_v20, %v679_v19 }
 0x36f   :  { %v2439_v22 = vpop.f32.mrf.mxu1 }
 0x370   :  { %2642 = vtanh.f32 %v835_v21 }
 0x375   :  { %v978_v23 = vpop.f32.mrf.mxu1 }
 0x376   :  { %v983_v24 = vrot.slane %v978_v23, 5  ;;  %v984_v27 = vrot.slane %v978_v23, 6 }
 0x377   :  { %v2461_v28 = vpop.f32.mrf.mxu1 }
 0x378   :  { %v987_v29 = vadd.f32 %v983_v24, %v2881_v26  ;;  %v988_v30 = vadd.f32 %v984_v27, %v2879_v25 }
 0x37a   :  { %2644 = vtanh.f32 %v987_v29 }
 0x37b   :  { %2646 = vtanh.f32 %v988_v30 }
 0x37d   :  { %v2996_v31 = vpop.eup %2642 }
 0x37e   :  { %2449 = vmatmul.mubr.msk.f32.vlgmr.msra.gmra.mxu0 %vm151_vm4, %v2996_v31 }
 0x37f   :  { %2463 = vmatpush3.msra.mxu0 %v2851_v15  ;;  %2470 = vmatprep.mubr.msk.f32.mxu0 %vm2697_vm2, %v2696_v4 }
 0x380   :  { %2464 = vmatprep.subr.mxu0 %v2696_v4 }
 0x381   :  { %2465 = vmatpush3.msra.mxu0 %v2858_v16 }
 0x382   :  { %2466 = vmatprep.subr.mxu0 %v2696_v4 }
 0x383   :  { %2467 = vmatpush3.msra.mxu0 %v2865_v17 }
 0x384   :  { %2468 = vmatprep.subr.mxu0 %v2696_v4 }
 0x385   :  { %2469 = vmatpush3.msra.mxu0 %v2872_v18 }
 0x386   :  { %2484 = vmatprep.subr.mxu0 %v2696_v4 }
 0x387   :  { %v2645_v32 = vpop.eup %2644 }
 0x388   :  { %v2647_v33 = vpop.eup %2646  ;;  %v993_v34 = vrot.slane %v2645_v32, 3 }
 0x389   :  { %v994_v36 = vrot.slane %v2647_v33, 2 }
 0x38b   :  { %v995_v37 = vsel %vm306_vm3, %v994_v36, %v993_v34 }
 0x38c   :  { %2471 = vmatmul.mubr.msk.f32.vlgmr.msra.gmra.mxu0 %vm151_vm4, %v995_v37 }
 0x38d   :  { %2485 = vmatpush3.msra.mxu0 %v2807_v11  ;;  %2492 = vmatprep.mubr.msk.f32.mxu0 %vm2697_vm2, %v2696_v4 }
 0x38e   :  { %2486 = vmatprep.subr.mxu0 %v2696_v4 }
 0x38f   :  { %2487 = vmatpush3.msra.mxu0 %v2815_v12 }
 0x390   :  { %2488 = vmatprep.subr.mxu0 %v2696_v4 }
 0x391   :  { %2489 = vmatpush3.msra.mxu0 %v2824_v13 }
 0x392   :  { %2490 = vmatprep.subr.mxu0 %v2696_v4 }
 0x393   :  { %2491 = vmatpush3.msra.mxu0 %v2831_v14 }
 0x394   :  { %2493 = vmatmul.mubr.msk.f32.vlgmr.msra.gmra.mxu0 %vm151_vm4, %v995_v37  ;;  %2506 = vmatprep.subr.mxu0 %v2696_v4 }
 0x395   :  { %2507 = vmatpush3.msra.mxu0 %v2777_v7  ;;  %2514 = vmatprep.mubr.msk.f32.mxu0 %vm2697_vm2, %v2696_v4 }
 0x396   :  { %2508 = vmatprep.subr.mxu0 %v2696_v4 }
 0x397   :  { %2509 = vmatpush3.msra.mxu0 %v2784_v8 }
 0x398   :  { %2510 = vmatprep.subr.mxu0 %v2696_v4 }
 0x399   :  { %2511 = vmatpush3.msra.mxu0 %v2793_v9 }
 0x39a   :  { %2512 = vmatprep.subr.mxu0 %v2696_v4 }
 0x39b   :  { %2513 = vmatpush3.msra.mxu0 %v2800_v10 }
 0x39c   :  { %2528 = vmatprep.subr.mxu0 %v2696_v4 }
 0x43e   :  { %v908_v38 = vpop.f32.mrf.mxu0 }
 0x43f   :  { %v909_v40 = vadd.f32 %v2911_v35, %v908_v38 }
 0x440   :  { %v2450_v39 = vpop.f32.mrf.mxu0 }
 0x44c   :  { %v1064_v41 = vpop.f32.mrf.mxu0 }
 0x44d   :  { %v1065_v42 = vadd.f32 %v1064_v41, %v909_v40 }
 0x44e   :  { %v2472_v43 = vpop.f32.mrf.mxu0 }
 0x44f   :  { %2648 = vtanh.f32 %v1065_v42 }
 0x454   :  { %v1208_v44 = vpop.f32.mrf.mxu0 }
 0x455   :  { %v1213_v46 = vrot.slane %v1208_v44, 4  ;;  %v1214_v47 = vrot.slane %v1208_v44, 5 }
 0x456   :  { %v2494_v48 = vpop.f32.mrf.mxu0 }
 0x457   :  { %v1217_v49 = vadd.f32 %v1213_v46, %v2881_v26  ;;  %v1218_v50 = vadd.f32 %v1214_v47, %v2879_v25 }
 0x459   :  { %2650 = vtanh.f32 %v1217_v49 }
 0x45a   :  { %2652 = vtanh.f32 %v1218_v50 }
 0x45c   :  { %v3036_v51 = vpop.eup %2648 }
 0x45d   :  { %2482 = vmatmul.mubr.msk.f32.vlgmr.msra.gmra.mxu1 %vm151_vm4, %v3036_v51 }
 0x45e   :  { %2496 = vmatpush3.msra.mxu1 %v2851_v15  ;;  %2503 = vmatprep.mubr.msk.f32.mxu1 %vm2697_vm2, %v2696_v4 }
 0x45f   :  { %2497 = vmatprep.subr.mxu1 %v2696_v4 }
 0x460   :  { %2498 = vmatpush3.msra.mxu1 %v2858_v16 }
 0x461   :  { %2499 = vmatprep.subr.mxu1 %v2696_v4 }
 0x462   :  { %2500 = vmatpush3.msra.mxu1 %v2865_v17 }
 0x463   :  { %2501 = vmatprep.subr.mxu1 %v2696_v4 }
 0x464   :  { %2502 = vmatpush3.msra.mxu1 %v2872_v18 }
 0x465   :  { %2517 = vmatprep.subr.mxu1 %v2696_v4 }
 0x466   :  { %v2651_v52 = vpop.eup %2650 }
 0x467   :  { %v2653_v53 = vpop.eup %2652  ;;  %v1223_v54 = vrot.slane %v2651_v52, 4 }
 0x468   :  { %v1224_v55 = vrot.slane %v2653_v53, 3 }
 0x46a   :  { %v1225_v56 = vsel %vm306_vm3, %v1224_v55, %v1223_v54 }
 0x46b   :  { %2504 = vmatmul.mubr.msk.f32.vlgmr.msra.gmra.mxu1 %vm151_vm4, %v1225_v56 }
 0x46c   :  { %2518 = vmatpush3.msra.mxu1 %v2807_v11  ;;  %2525 = vmatprep.mubr.msk.f32.mxu1 %vm2697_vm2, %v2696_v4 }
 0x46d   :  { %2519 = vmatprep.subr.mxu1 %v2696_v4 }
 0x46e   :  { %2520 = vmatpush3.msra.mxu1 %v2815_v12 }
 0x46f   :  { %2521 = vmatprep.subr.mxu1 %v2696_v4 }
 0x470   :  { %2522 = vmatpush3.msra.mxu1 %v2824_v13 }
 0x471   :  { %2523 = vmatprep.subr.mxu1 %v2696_v4 }
 0x472   :  { %2524 = vmatpush3.msra.mxu1 %v2831_v14 }
 0x473   :  { %2526 = vmatmul.mubr.msk.f32.vlgmr.msra.gmra.mxu1 %vm151_vm4, %v1225_v56  ;;  %2539 = vmatprep.subr.mxu1 %v2696_v4  ;;  %v2045_v56 = vld [vmem:[%s3271_s7 + $0xe8] sm:$0xff] }
 0x474   :  { %2540 = vmatpush3.msra.mxu1 %v2777_v7  ;;  %2547 = vmatprep.mubr.msk.f32.mxu1 %vm2697_vm2, %v2696_v4 }
 0x475   :  { %2541 = vmatprep.subr.mxu1 %v2696_v4 }
 0x476   :  { %2542 = vmatpush3.msra.mxu1 %v2784_v8 }
 0x477   :  { %2543 = vmatprep.subr.mxu1 %v2696_v4 }
 0x478   :  { %2544 = vmatpush3.msra.mxu1 %v2793_v9 }
 0x479   :  { %2545 = vmatprep.subr.mxu1 %v2696_v4 }
 0x47a   :  { %2546 = vmatpush3.msra.mxu1 %v2800_v10 }
 0x47b   :  { %2561 = vmatprep.subr.mxu1 %v2696_v4 }
 0x51d   :  { %v1138_v57 = vpop.f32.mrf.mxu1 }
 0x51e   :  { %v1139_v59 = vadd.f32 %v2911_v35, %v1138_v57  ;;  %v2029_v57 = vld [vmem:[%s3271_s7 + $0x68] sm:$0xff] }
 0x51f   :  { %v2483_v58 = vpop.f32.mrf.mxu1 }
 0x520   :  { %v2044_v58 = vld [vmem:[%s3271_s7 + $0xe0] sm:$0xff] }
 0x52b   :  { %v1294_v60 = vpop.f32.mrf.mxu1 }
 0x52c   :  { %v1295_v61 = vadd.f32 %v1294_v60, %v1139_v59  ;;  %v2028_v59 = vld [vmem:[%s3271_s7 + $0x60] sm:$0xff]  ;;  %v2043_v60 = vld [vmem:[%s3271_s7 + $0xd8] sm:$0xff] }
 0x52d   :  { %v2505_v63 = vpop.f32.mrf.mxu1 }
 0x52e   :  { %2654 = vtanh.f32 %v1295_v61  ;;  %v2027_v61 = vld [vmem:[%s3271_s7 + $0x58] sm:$0xff]  ;;  %v2042_v63 = vld [vmem:[%s3271_s7 + $0xd0] sm:$0xff] }
 0x533   :  { %v1438_v0 = vpop.f32.mrf.mxu1 }
 0x534   :  { %v1443_v1 = vrot.slane %v1438_v0, 3  ;;  %v1444_v2 = vrot.slane %v1438_v0, 4  ;;  %v2026_v0 = vld [vmem:[%s3271_s7 + $0x50] sm:$0xff] }
 0x535   :  { %v2527_v3 = vpop.f32.mrf.mxu1 }
 0x536   :  { %v1447_v5 = vadd.f32 %v1443_v1, %v2881_v26  ;;  %v1448_v6 = vadd.f32 %v1444_v2, %v2879_v25  ;;  %v2041_v1 = vld [vmem:[%s3271_s7 + $0xc8] sm:$0xff]  ;;  %v2040_v3 = vld [vmem:[%s3271_s7 + $0xc0] sm:$0xff] }
 0x537   :  { %v2025_v2 = vld [vmem:[%s3271_s7 + $0x48] sm:$0xff] }
 0x538   :  { %2656 = vtanh.f32 %v1447_v5  ;;  %v2024_v5 = vld [vmem:[%s3271_s7 + $0x40] sm:$0xff] }
 0x539   :  { %2658 = vtanh.f32 %v1448_v6  ;;  %v2039_v6 = vld [vmem:[%s3271_s7 + $0xb8] sm:$0xff] }
 0x53b   :  { %v3076_v19 = vpop.eup %2654 }
 0x53c   :  { %2515 = vmatmul.mubr.msk.f32.vlgmr.msra.gmra.mxu0 %vm151_vm4, %v3076_v19 }
 0x53d   :  { %2529 = vmatpush3.msra.mxu0 %v2851_v15  ;;  %2536 = vmatprep.mubr.msk.f32.mxu0 %vm2697_vm2, %v2696_v4 }
 0x53e   :  { %2530 = vmatprep.subr.mxu0 %v2696_v4 }
 0x53f   :  { %2531 = vmatpush3.msra.mxu0 %v2858_v16 }
 0x540   :  { %2532 = vmatprep.subr.mxu0 %v2696_v4 }
 0x541   :  { %2533 = vmatpush3.msra.mxu0 %v2865_v17 }
 0x542   :  { %2534 = vmatprep.subr.mxu0 %v2696_v4 }
 0x543   :  { %2535 = vmatpush3.msra.mxu0 %v2872_v18 }
 0x544   :  { %2550 = vmatprep.subr.mxu0 %v2696_v4 }
 0x545   :  { %v2657_v20 = vpop.eup %2656 }
 0x546   :  { %v2659_v21 = vpop.eup %2658  ;;  %v1453_v22 = vrot.slane %v2657_v20, 5  ;;  %v2023_v20 = vld [vmem:[%s3271_s7 + $0x38] sm:$0xff] }
 0x547   :  { %v1454_v23 = vrot.slane %v2659_v21, 4  ;;  %v2038_v21 = vld [vmem:[%s3271_s7 + $0xb0] sm:$0xff] }
 0x549   :  { %v1455_v24 = vsel %vm306_vm3, %v1454_v23, %v1453_v22  ;;  %v2022_v22 = vld [vmem:[%s3271_s7 + $0x30] sm:$0xff]  ;;  %v2037_v23 = vld [vmem:[%s3271_s7 + $0xa8] sm:$0xff] }
 0x54a   :  { %2537 = vmatmul.mubr.msk.f32.vlgmr.msra.gmra.mxu0 %vm151_vm4, %v1455_v24 }
 0x54b   :  { %2551 = vmatpush3.msra.mxu0 %v2807_v11  ;;  %2558 = vmatprep.mubr.msk.f32.mxu0 %vm2697_vm2, %v2696_v4 }
 0x54c   :  { %2552 = vmatprep.subr.mxu0 %v2696_v4 }
 0x54d   :  { %2553 = vmatpush3.msra.mxu0 %v2815_v12 }
 0x54e   :  { %2554 = vmatprep.subr.mxu0 %v2696_v4 }
 0x54f   :  { %2555 = vmatpush3.msra.mxu0 %v2824_v13 }
 0x550   :  { %2556 = vmatprep.subr.mxu0 %v2696_v4 }
 0x551   :  { %2557 = vmatpush3.msra.mxu0 %v2831_v14 }
 0x552   :  { %2559 = vmatmul.mubr.msk.f32.vlgmr.msra.gmra.mxu0 %vm151_vm4, %v1455_v24  ;;  %2572 = vmatprep.subr.mxu0 %v2696_v4  ;;  %v2021_v24 = vld [vmem:[%s3271_s7 + $0x28] sm:$0xff] }
 0x553   :  { %2573 = vmatpush3.msra.mxu0 %v2777_v7  ;;  %2580 = vmatprep.mubr.msk.f32.mxu0 %vm2697_vm2, %v2696_v4 }
 0x554   :  { %2574 = vmatprep.subr.mxu0 %v2696_v4 }
 0x555   :  { %2575 = vmatpush3.msra.mxu0 %v2784_v8 }
 0x556   :  { %2576 = vmatprep.subr.mxu0 %v2696_v4 }
 0x557   :  { %2577 = vmatpush3.msra.mxu0 %v2793_v9 }
 0x558   :  { %2578 = vmatprep.subr.mxu0 %v2696_v4 }
 0x559   :  { %2579 = vmatpush3.msra.mxu0 %v2800_v10 }
 0x55a   :  { %2594 = vmatprep.subr.mxu0 %v2696_v4 }
 0x5fc   :  { %v1368_v27 = vpop.f32.mrf.mxu0 }
 0x5fd   :  { %v1369_v7 = vadd.f32 %v2911_v35, %v1368_v27  ;;  %v2036_v27 = vld [vmem:[%s3271_s7 + $0xa0] sm:$0xff] }
 0x5fe   :  { %v2516_v28 = vpop.f32.mrf.mxu0 }
 0x5ff   :  { %v2020_v28 = vld [vmem:[%s3271_s7 + $0x20] sm:$0xff] }
 0x60a   :  { %v1524_v29 = vpop.f32.mrf.mxu0 }
 0x60b   :  { %v1525_v30 = vadd.f32 %v1524_v29, %v1369_v7  ;;  %v2035_v7 = vld [vmem:[%s3271_s7 + $0x98] sm:$0xff] }
 0x60c   :  { %v2538_v32 = vpop.f32.mrf.mxu0  ;;  %v2019_v29 = vld [vmem:[%s3271_s7 + $0x18] sm:$0xff] }
 0x60d   :  { %2660 = vtanh.f32 %v1525_v30  ;;  %v2034_v30 = vld [vmem:[%s3271_s7 + $0x90] sm:$0xff] }
 0x60e   :  { %v2018_v32 = vld [vmem:[%s3271_s7 + $0x10] sm:$0xff] }
 0x612   :  { %v1668_v33 = vpop.f32.mrf.mxu0 }
 0x613   :  { %v1673_v8 = vrot.slane %v1668_v33, 2  ;;  %v1674_v34 = vrot.slane %v1668_v33, 3 }
 0x614   :  { %v2560_v36 = vpop.f32.mrf.mxu0 }
 0x615   :  { %v1677_v9 = vadd.f32 %v1673_v8, %v2881_v26  ;;  %v1678_v37 = vadd.f32 %v1674_v34, %v2879_v25 }
 0x617   :  { %2662 = vtanh.f32 %v1677_v9 }
 0x618   :  { %2664 = vtanh.f32 %v1678_v37 }
 0x61a   :  { %v2661_v10 = vpop.eup %2660 }
 0x61b   :  { %2548 = vmatmul.mubr.msk.f32.vlgmr.msra.gmra.mxu1 %vm151_vm4, %v2661_v10  ;;  %v2611_v38 = vpack.i.bf16 %v2956_v62, %v2661_v10  ;;  %v2033_v10 = vld [vmem:[%s3271_s7 + $0x88] sm:$0xff] }
 0x61c   :  { %2562 = vmatpush3.msra.mxu1 %v2851_v15  ;;  %2569 = vmatprep.mubr.msk.f32.mxu1 %vm2697_vm2, %v2696_v4 }
 0x61d   :  { %2612 = vrot.lane.b32.xlu0 %v2611_v38, %s2698_s6  ;;  %2563 = vmatprep.subr.mxu1 %v2696_v4  ;;  %v2017_v38 = vld [vmem:[%s3271_s7 + $0x8] sm:$0xff] }
 0x61e   :  { %2564 = vmatpush3.msra.mxu1 %v2858_v16 }
 0x61f   :  { %2565 = vmatprep.subr.mxu1 %v2696_v4 }
 0x620   :  { %2566 = vmatpush3.msra.mxu1 %v2865_v17 }
 0x621   :  { %2567 = vmatprep.subr.mxu1 %v2696_v4 }
 0x622   :  { %2568 = vmatpush3.msra.mxu1 %v2872_v18 }
 0x623   :  { %2583 = vmatprep.subr.mxu1 %v2696_v4 }
 0x624   :  { %v2663_v62 = vpop.eup %2662 }
 0x625   :  { %v2665_v39 = vpop.eup %2664  ;;  %v1683_v40 = vrot.slane %v2663_v62, 6  ;;  %v2032_v62 = vld [vmem:[%s3271_s7 + $0x80] sm:$0xff] }
 0x626   :  { %v1684_v41 = vrot.slane %v2665_v39, 5 }
 0x628   :  { %v1685_v42 = vsel %vm306_vm3, %v1684_v41, %v1683_v40 }
 0x629   :  { %2570 = vmatmul.mubr.msk.f32.vlgmr.msra.gmra.mxu1 %vm151_vm4, %v1685_v42 }
 0x62a   :  { %2584 = vmatpush3.msra.mxu1 %v2807_v11  ;;  %2591 = vmatprep.mubr.msk.f32.mxu1 %vm2697_vm2, %v2696_v4 }
 0x62b   :  { %2585 = vmatprep.subr.mxu1 %v2696_v4 }
 0x62c   :  { %2586 = vmatpush3.msra.mxu1 %v2815_v12 }
 0x62d   :  { %2587 = vmatprep.subr.mxu1 %v2696_v4 }
 0x62e   :  { %2588 = vmatpush3.msra.mxu1 %v2824_v13 }
 0x62f   :  { %2589 = vmatprep.subr.mxu1 %v2696_v4 }
 0x630   :  { %2590 = vmatpush3.msra.mxu1 %v2831_v14 }
 0x631   :  { %2592 = vmatmul.mubr.msk.f32.vlgmr.msra.gmra.mxu1 %vm151_vm4, %v1685_v42 }
 0x68f   :  { %v2613_v41 = vpop.permute.xlu0 %2612 }
 0x6db   :  { %v1598_v43 = vpop.f32.mrf.mxu1 }
 0x6dc   :  { %v1599_v11 = vadd.f32 %v2911_v35, %v1598_v43  ;;  %v2615_v43 = vunpack.i.h.bf16 %v2613_v41 }
 0x6dd   :  { %v2549_v44 = vpop.f32.mrf.mxu1 }
 0x6de   :  { %v2614_v44 = vunpack.i.l.bf16 %v2613_v41 }
 0x6e9   :  { %v1754_v46 = vpop.f32.mrf.mxu1 }
 0x6ea   :  { %v1755_v47 = vadd.f32 %v1754_v46, %v1599_v11 }
 0x6eb   :  { %v2571_v48 = vpop.f32.mrf.mxu1 }
 0x6ec   :  { %2666 = vtanh.f32 %v1755_v47  ;;  %v2008_v48 = vsel %vm151_vm4, %v2916_v45, %v2615_v43 }
 0x6f1   :  { %v1898_v49 = vpop.f32.mrf.mxu1 }
 0x6f2   :  { %v1903_v12 = vrot.slane %v1898_v49, 1  ;;  %v1904_v50 = vrot.slane %v1898_v49, 2 }
 0x6f3   :  { %v2593_v52 = vpop.f32.mrf.mxu1 }
 0x6f4   :  { %v1907_v13 = vadd.f32 %v1903_v12, %v2881_v26  ;;  %v1908_v53 = vadd.f32 %v1904_v50, %v2879_v25  ;;  %v2013_v50 = vsel %vm151_vm4, %v3076_v19, %v2614_v44 }
 0x6f6   :  { %2668 = vtanh.f32 %v1907_v13 }
 0x6f7   :  { %2670 = vtanh.f32 %v1908_v53 }
 0x6f9   :  { %v2667_v14 = vpop.eup %2666 }
 0x6fa   :  { %2581 = vmatmul.mubr.msk.f32.vlgmr.msra.gmra.mxu0 %vm151_vm4, %v2667_v14  ;;  %v2616_v54 = vpack.i.bf16 %v2996_v31, %v2667_v14 }
 0x6fb   :  { %2595 = vmatpush3.msra.mxu0 %v2851_v15  ;;  %2602 = vmatprep.mubr.msk.f32.mxu0 %vm2697_vm2, %v2696_v4 }
 0x6fc   :  { %2617 = vrot.lane.b32.xlu0 %v2616_v54, %s2699_s22  ;;  %2596 = vmatprep.subr.mxu0 %v2696_v4  ;;  %v2168_v54 = vld [vmem:[%s3272_s8] ss:$0 sm:$0xff] }
 0x6fd   :  { %2597 = vmatpush3.msra.mxu0 %v2858_v16  ;;  %v2047_v16 = vld [vmem:[%s3271_s7 + $0xf8] sm:$0xff] }
 0x6fe   :  { %2598 = vmatprep.subr.mxu0 %v2696_v4  ;;  %2295 = vmatprep.subr.mxu1 %v2047_v16 }
 0x6ff   :  { %2599 = vmatpush3.msra.mxu0 %v2865_v17  ;;  %v2031_v17 = vld [vmem:[%s3271_s7 + $0x78] sm:$0xff] }
 0x700   :  { %2600 = vmatprep.subr.mxu0 %v2696_v4  ;;  %v2046_v4 = vld [vmem:[%s3271_s7 + $0xf0] sm:$0xff]  ;;  %2296 = vmatpush3.msra.mxu1 %v2031_v17 }
 0x701   :  { %2601 = vmatpush3.msra.mxu0 %v2872_v18  ;;  %v2030_v18 = vld [vmem:[%s3271_s7 + $0x70] sm:$0xff]  ;;  %2297 = vmatprep.subr.mxu1 %v2046_v4 }
 0x702   :  { %2298 = vmatpush3.msra.mxu1 %v2030_v18 }
 0x703   :  { %v2669_v25 = vpop.eup %2668  ;;  %2299 = vmatprep.subr.mxu1 %v2045_v56 }
 0x704   :  { %v2671_v26 = vpop.eup %2670  ;;  %v1913_v15 = vrot.slane %v2669_v25, 7  ;;  %2300 = vmatpush3.msra.mxu1 %v2029_v57 }
 0x705   :  { %v1914_v31 = vrot.slane %v2671_v26, 6  ;;  %2301 = vmatprep.subr.mxu1 %v2044_v58 }
 0x706   :  { %2302 = vmatpush3.msra.mxu1 %v2028_v59 }
 0x707   :  { %v1915_v55 = vsel %vm306_vm3, %v1914_v31, %v1913_v15  ;;  %2303 = vmatprep.subr.mxu1 %v2043_v60 }
 0x708   :  { %2603 = vmatmul.mubr.msk.f32.vlgmr.msra.gmra.mxu0 %vm151_vm4, %v1915_v55  ;;  %2304 = vmatpush3.msra.mxu1 %v2027_v61 }
 0x709   :  { %2305 = vmatprep.subr.mxu1 %v2042_v63 }
 0x70a   :  { %2306 = vmatpush3.msra.mxu1 %v2026_v0 }
 0x70b   :  { %2307 = vmatprep.subr.mxu1 %v2041_v1 }
 0x70c   :  { %2308 = vmatpush3.msra.mxu1 %v2025_v2 }
 0x70d   :  { %2309 = vmatprep.subr.mxu1 %v2040_v3 }
 0x70e   :  { %2310 = vmatpush3.msra.mxu1 %v2024_v5 }
 0x70f   :  { %2311 = vmatprep.subr.mxu1 %v2039_v6 }
 0x710   :  { %2312 = vmatpush3.msra.mxu1 %v2023_v20 }
 0x711   :  { %2313 = vmatprep.subr.mxu1 %v2038_v21 }
 0x712   :  { %2314 = vmatpush3.msra.mxu1 %v2022_v22 }
 0x713   :  { %2315 = vmatprep.subr.mxu1 %v2037_v23 }
 0x714   :  { %2316 = vmatpush3.msra.mxu1 %v2021_v24 }
 0x715   :  { %2317 = vmatprep.subr.mxu1 %v2036_v27 }
 0x716   :  { %2318 = vmatpush3.msra.mxu1 %v2020_v28 }
 0x717   :  { %2319 = vmatprep.subr.mxu1 %v2035_v7 }
 0x718   :  { %2320 = vmatpush3.msra.mxu1 %v2019_v29 }
 0x719   :  { %2321 = vmatprep.subr.mxu1 %v2034_v30 }
 0x71a   :  { %2322 = vmatpush3.msra.mxu1 %v2018_v32 }
 0x71b   :  { %2323 = vmatprep.subr.mxu1 %v2033_v10 }
 0x71c   :  { %2324 = vmatpush3.msra.mxu1 %v2017_v38 }
 0x71d   :  { %2325 = vmatprep.subr.mxu1 %v2032_v62 }
 0x76e   :  { %v2618_v42 = vpop.permute.xlu0 %2617 }
 0x76f   :  { %v2620_v11 = vunpack.i.h.bf16 %v2618_v42  ;;  %v2619_v46 = vunpack.i.l.bf16 %v2618_v42 }
 0x771   :  { %v2014_v52 = vsel %vm2009_vm5, %v2013_v50, %v2619_v46 }
 0x7ba   :  { %v1828_v33 = vpop.f32.mrf.mxu0 }
 0x7bb   :  { %v1829_v34 = vadd.f32 %v2911_v35, %v1828_v33  ;;  %v2016_v35 = vld [vmem:[%s3271_s7] sm:$0xff] }
 0x7bc   :  { %v2582_v8 = vpop.f32.mrf.mxu0  ;;  %2326 = vmatpush3.msra.mxu1 %v2016_v35 }
 0x7c8   :  { %v1984_v36 = vpop.f32.mrf.mxu0 }
 0x7c9   :  { %v1985_v9 = vadd.f32 %v1984_v36, %v1829_v34 }
 0x7ca   :  { %v2604_v37 = vpop.f32.mrf.mxu0 }
 0x7cb   :  { %2672 = vtanh.f32 %v1985_v9 }
 0x7d8   :  { %v2673_v39 = vpop.eup %2672 }
 0x7d9   :  { %v2621_v40 = vpack.i.bf16 %v3036_v51, %v2673_v39  ;;  %v2010_v51 = vsel %vm2009_vm5, %v2008_v48, %v2620_v11 }
 0x7db   :  { %2622 = vrot.lane.b32.xlu1 %v2621_v40, %s2700_s29 }
 0x84d   :  { %v2623_v47 = vpop.permute.xlu1 %2622 }
 0x84e   :  { %v2625_v49 = vunpack.i.h.bf16 %v2623_v47  ;;  %v2624_v12 = vunpack.i.l.bf16 %v2623_v47 }
 0x850   :  { %v2015_v13 = vsel %vm2011_vm6, %v2014_v52, %v2624_v12  ;;  %v2012_v53 = vsel %vm2011_vm6, %v2010_v51, %v2625_v49 }
 0x851   :  { %2119 = vmatprep.mubr.f32.mxu1 %v2015_v13 }
 0x852   :  { %2120 = vmatmul.mubr.f32.vlgmr.msra.gmra.mxu1 %v2012_v53 }
 0x912   :  { %v2327_v14 = vpop.f32.mrf.mxu1 }
 0x914   :  { %v2328_v25 = vpop.f32.mrf.mxu1 }
 0x915   :  { %v2329_v45 = vadd.f32 %v2328_v25, %v2327_v14 }
 0x917   :  { %v2122_v26 = vadd.f32 %v2329_v45, %v2168_v54 }
 0x919   :  { %2126 = vst.msk [vmem:[#allocation2] sm:$0x3] %vm2125_vm7, %v2122_v26 }
 0x91a   :  { %2685 = shalt.err (!%p2682_p4)
}
 0x91b   :  { %2136 = dma.vmem_to_hbm [thread:$0]  %s2134_s10, 32, %s3273_s9, [#allocation3]  }
 0x91c   :  { %2694 = dma.done.wait [#allocation3], 32  }
 0x91d   :  { %2695 = vsyncadd [#allocation3], 4294967264 }
 0x91e   :  { %2140 = vsyncpa [#allocation3], 1 }

</bundles_post_ra>
